<compile_context>
chip_gen: v6e
topology: v6e:2x2x1
jax: 0.10.0
libtpu: 0.0.40
codegen_flags: <defaults>
</compile_context>

<pallas_src>
import functools

import numpy as np

import jax
import jax.numpy as jnp
from jax import lax
from jax.experimental import pallas as pl
from jax.experimental.pallas import tpu as pltpu

_NEG_INF = float("-inf")


# ----------------------------------------------------------------------------
# in-kernel helpers
# ----------------------------------------------------------------------------
def _fg_logits_max_labels(logits, n_fg):
    """Foreground-masked logits, their max, and first-index argmax.

    Builds the (B,Q,C) class-index iota exactly once and reuses it for both
    the foreground mask and the argmax.
    """
    c = logits.shape[-1]
    col = lax.broadcasted_iota(jnp.int32, logits.shape, 2)
    fg_logits = jnp.where(col < n_fg, logits, _NEG_INF)
    fg_max = jnp.max(fg_logits, axis=-1, keepdims=True)                  # (B,Q,1)
    labels = jnp.min(jnp.where(fg_logits == fg_max, col, c), axis=-1)    # (B,Q)
    return fg_logits, fg_max, labels.astype(jnp.int32)


def _cxcywh_to_xyxy_scaled(b, scale):
    """b: (B, Q, 4) rows [cx, cy, w, h]; scale: (B, 1, 4) rows [w, h, w, h]."""
    cx, cy = b[:, :, 0:1], b[:, :, 1:2]
    hw, hh = 0.5 * b[:, :, 2:3], 0.5 * b[:, :, 3:4]
    xyxy = jnp.concatenate([cx - hw, cy - hh, cx + hw, cy + hh], axis=-1)
    return xyxy * scale


# ----------------------------------------------------------------------------
# kernels
# ----------------------------------------------------------------------------
def _hoi_kernel(obj_logits_ref, verb_logits_ref, sub_boxes_ref, obj_boxes_ref,
                scale_ref, labels_ref, verb_ref, sub_out_ref, obj_out_ref,
                *, drop_second_last):
    logits = obj_logits_ref[...].astype(jnp.float32)                     # (Bt,Q,C)
    c = logits.shape[-1]
    n_fg = c - 2 if drop_second_last else c - 1

    fg_logits, fg_max, labels = _fg_logits_max_labels(logits, n_fg)
    labels_ref[...] = labels                                             # (Bt,Q)

    # softmax prob of the best foreground class over the included class set
    # (foreground classes + last background column), without a second
    # full-width max reduce or a second (B,Q,C) mask.
    # TODO(synk): if whole rows of padded/masked -inf logits can occur, guard
    # against m == -inf producing NaNs (real model logits never hit this).
    bg = logits[:, :, c - 1:c]                                           # (Bt,Q,1)
    m = jnp.maximum(fg_max, bg)
    denom = (jnp.sum(jnp.exp(fg_logits - m), axis=-1, keepdims=True)
             + jnp.exp(bg - m))
    obj_scores = jnp.exp(fg_max - m) / denom                             # (Bt,Q,1)

    # verb scores scaled by the object score ('hoi' branch semantics)
    verb_ref[...] = (jax.nn.sigmoid(verb_logits_ref[...].astype(jnp.float32))
                     * obj_scores)

    # scaled xyxy boxes, sub and obj written as separate full blocks
    scale = scale_ref[...]                                               # (Bt,1,4)
    sub_out_ref[...] = _cxcywh_to_xyxy_scaled(
        sub_boxes_ref[...].astype(jnp.float32), scale)
    obj_out_ref[...] = _cxcywh_to_xyxy_scaled(
        obj_boxes_ref[...].astype(jnp.float32), scale)


def _att_kernel(obj_logits_ref, att_logits_ref, obj_boxes_ref, scale_ref,
                labels_ref, attr_ref, boxes_ref):
    logits = obj_logits_ref[...].astype(jnp.float32)                     # (Bt,Q,C)
    c = logits.shape[-1]
    # 'att' always uses the hico-style column drop; only the argmax label is
    # consumed downstream, so no softmax / score computation at all.
    _, _, labels = _fg_logits_max_labels(logits, c - 2)
    labels_ref[...] = labels                                             # (Bt,Q)

    attr_ref[...] = jax.nn.sigmoid(att_logits_ref[...].astype(jnp.float32))

    boxes_ref[...] = _cxcywh_to_xyxy_scaled(
        obj_boxes_ref[...].astype(jnp.float32), scale_ref[...])          # (Bt,Q,4)


# ----------------------------------------------------------------------------
# pallas_call wrappers
# ----------------------------------------------------------------------------
def _pick_block_b(b):
    """Batch tile: single step for tiny B, else 8 images per step.

    Keeps the (8,128) block rule satisfied (Bt == B or Bt % 8 == 0) and gives
    >= ~0.5 MB tiles at production sizes so pipelining reaches HBM roofline.
    """
    if b <= 8:
        return b
    if b % 8 == 0:
        return 8
    return b  # fallback: single step (blocks equal full array dims)


def _vmem_limit_bytes(block_bytes):
    # double-buffered in/out blocks + margin, clamped to a range that is safe
    # on v5e (raises its 16 MiB default) and v7x (64 MiB physical VMEM).
    need = 2 * block_bytes + (4 << 20)
    return int(max(32 << 20, min(64 << 20, need)))


def _compiler_params(block_bytes):
    return pltpu.CompilerParams(
        dimension_semantics=("parallel",),
        vmem_limit_bytes=_vmem_limit_bytes(block_bytes),
    )


def _run_hoi(obj_logits, verb_logits, sub_boxes, obj_boxes, scale,
             *, drop_second_last):
    B, Q, C = obj_logits.shape
    V = verb_logits.shape[-1]
    Bt = _pick_block_b(B)
    grid = (B // Bt,)

    def spec3(d):
        return pl.BlockSpec((Bt, Q, d), lambda b: (b, 0, 0))

    block_bytes = 4 * Bt * (Q * C + 2 * Q * V + 4 * Q * 4 + 4 + Q)
    kernel = functools.partial(_hoi_kernel, drop_second_last=drop_second_last)

    return pl.pallas_call(
        kernel,
        grid=grid,
        in_specs=[spec3(C), spec3(V), spec3(4), spec3(4),
                  pl.BlockSpec((Bt, 1, 4), lambda b: (b, 0, 0))],
        out_specs=(pl.BlockSpec((Bt, Q), lambda b: (b, 0)),
                   spec3(V), spec3(4), spec3(4)),
        out_shape=(jax.ShapeDtypeStruct((B, Q), jnp.int32),      # obj labels
                   jax.ShapeDtypeStruct((B, Q, V), jnp.float32),  # verb scores
                   jax.ShapeDtypeStruct((B, Q, 4), jnp.float32),  # sub boxes xyxy
                   jax.ShapeDtypeStruct((B, Q, 4), jnp.float32)), # obj boxes xyxy
        compiler_params=_compiler_params(block_bytes),
    )(obj_logits, verb_logits, sub_boxes, obj_boxes, scale)


def _run_att(obj_logits, att_logits, obj_boxes, scale):
    B, Q, C = obj_logits.shape
    V = att_logits.shape[-1]
    Bt = _pick_block_b(B)
    grid = (B // Bt,)

    def spec3(d):
        return pl.BlockSpec((Bt, Q, d), lambda b: (b, 0, 0))

    block_bytes = 4 * Bt * (Q * C + 2 * Q * V + 2 * Q * 4 + 4 + Q)

    return pl.pallas_call(
        _att_kernel,
        grid=grid,
        in_specs=[spec3(C), spec3(V), spec3(4),
                  pl.BlockSpec((Bt, 1, 4), lambda b: (b, 0, 0))],
        out_specs=(pl.BlockSpec((Bt, Q), lambda b: (b, 0)),
                   spec3(V), spec3(4)),
        out_shape=(jax.ShapeDtypeStruct((B, Q), jnp.int32),      # labels
                   jax.ShapeDtypeStruct((B, Q, V), jnp.float32),  # attr scores
                   jax.ShapeDtypeStruct((B, Q, 4), jnp.float32)), # boxes xyxy
        compiler_params=_compiler_params(block_bytes),
    )(obj_logits, att_logits, obj_boxes, scale)


def _make_scale(target_sizes):
    ts = target_sizes.astype(jnp.float32)
    img_h, img_w = ts[:, 0], ts[:, 1]
    # (B, 1, 4): [w, h, w, h] per image, matching the (B,Q,4) box layout.
    return jnp.stack([img_w, img_h, img_w, img_h], axis=-1)[:, None, :]


@functools.partial(jax.jit, static_argnames=("drop_second_last",))
def _hoi_device(obj_logits, verb_logits, sub_boxes, obj_boxes, target_sizes,
                *, drop_second_last):
    scale = _make_scale(target_sizes)
    return _run_hoi(obj_logits, verb_logits, sub_boxes, obj_boxes, scale,
                    drop_second_last=drop_second_last)


@jax.jit
def _att_device(obj_logits, att_logits, obj_boxes, target_sizes):
    scale = _make_scale(target_sizes)
    return _run_att(obj_logits, att_logits, obj_boxes, scale)


# ----------------------------------------------------------------------------
# module wrapper
# ----------------------------------------------------------------------------
class PostProcessHOIATT:
    """JAX/Pallas re-implementation of PostProcessHOI_ATT.forward.

    All device work happens in a single jitted call containing one Pallas
    kernel; per-image result dicts are assembled on host after ONE
    device_get (the original torch module moves results to CPU anyway).
    """

    def __init__(self, subject_category_id):
        self.subject_category_id = int(subject_category_id)

    def __call__(self, outputs, target_sizes):
        target_sizes = jnp.asarray(target_sizes, jnp.float32)

        if outputs['type'] == 'hoi':
            if outputs['dataset'] == 'vcoco':
                drop_second_last = False
            elif outputs['dataset'] == 'hico':
                drop_second_last = True
            else:
                raise ValueError(outputs['dataset'])

            dev_out = _hoi_device(
                outputs['pred_obj_logits'], outputs['pred_logits'],
                outputs['pred_sub_boxes'], outputs['pred_obj_boxes'],
                target_sizes, drop_second_last=drop_second_last)
            jax.block_until_ready(dev_out)
            obj_labels, verb_scores, sub_xyxy, obj_xyxy = jax.device_get(dev_out)

            B, Q = obj_labels.shape
            subj = np.full((B, Q), self.subject_category_id, obj_labels.dtype)
            labels_all = np.concatenate([subj, obj_labels], axis=1)      # (B,2Q)
            boxes_all = np.concatenate([sub_xyxy, obj_xyxy], axis=1)     # (B,2Q,4)
            ids = np.arange(2 * Q)
            sub_ids, obj_ids = ids[:Q], ids[Q:]

            return [{
                'labels': labels_all[i],
                'boxes': boxes_all[i],
                'verb_scores': verb_scores[i],
                'sub_ids': sub_ids,
                'obj_ids': obj_ids,
            } for i in range(B)]

        elif outputs['type'] == 'att':
            assert outputs['pred_obj_logits'].shape[0] == target_sizes.shape[0]
            assert target_sizes.shape[1] == 2

            dev_out = _att_device(
                outputs['pred_obj_logits'], outputs['pred_logits'],
                outputs['pred_obj_boxes'], target_sizes)
            jax.block_until_ready(dev_out)
            labels, attr_scores, boxes = jax.device_get(dev_out)

            B, Q = labels.shape
            ids = np.arange(Q)
            return [{
                'labels': labels[i],
                'boxes': boxes[i],
                'attr_scores': attr_scores[i],
                'obj_ids': ids,
            } for i in range(B)]

        else:
            raise ValueError(outputs['type'])


PostProcessHOI_ATT = PostProcessHOIATT  # name alias matching the torch module


# ----------------------------------------------------------------------------
# pure-JAX reference (for correctness checks only)
# ----------------------------------------------------------------------------
def _reference_hoi(pred_obj_logits, pred_logits, pred_sub_boxes,
                   pred_obj_boxes, target_sizes, dataset):
    if dataset == 'hico':
        logits_r = jnp.concatenate(
            [pred_obj_logits[..., :-2], pred_obj_logits[..., -1:]], axis=-1)
    else:
        logits_r = pred_obj_logits
    probs = jax.nn.softmax(logits_r, axis=-1)
    obj_scores = probs[..., :-1].max(-1)
    obj_labels = probs[..., :-1].argmax(-1)
    verb_scores = jax.nn.sigmoid(pred_logits) * obj_scores[..., None]
    img_h, img_w = target_sizes[:, 0], target_sizes[:, 1]
    scale = jnp.stack([img_w, img_h, img_w, img_h], axis=1)[:, None, :]

    def xyxy(b):
        cx, cy, w, h = b[..., 0], b[..., 1], b[..., 2], b[..., 3]
        return jnp.stack([cx - 0.5 * w, cy - 0.5 * h,
                          cx + 0.5 * w, cy + 0.5 * h], axis=-1)

    return (obj_scores, obj_labels, verb_scores,
            xyxy(pred_sub_boxes) * scale, xyxy(pred_obj_boxes) * scale)


# ----------------------------------------------------------------------------
# self-test
# ----------------------------------------------------------------------------
if __name__ == "__main__":
    key = jax.random.PRNGKey(0)
    B, Q, C, V = 2, 8, 12, 16   # batch, queries, obj classes (incl. bg), verbs

    k1, k2, k3, k4 = jax.random.split(key, 4)
    pred_obj_logits = jax.random.normal(k1, (B, Q, C), jnp.float32)
    pred_logits = jax.random.normal(k2, (B, Q, V), jnp.float32)
    pred_sub_boxes = jax.random.uniform(k3, (B, Q, 4), jnp.float32,
                                        minval=0.1, maxval=0.5)
    pred_obj_boxes = jax.random.uniform(k4, (B, Q, 4), jnp.float32,
                                        minval=0.1, maxval=0.5)
    target_sizes = jnp.array([[480.0, 640.0], [512.0, 384.0]], jnp.float32)

    pp = PostProcessHOIATT(subject_category_id=1)

    # ---- 'hoi' / 'hico' branch ----
    outputs = {
        'type': 'hoi', 'dataset': 'hico',
        'pred_obj_logits': pred_obj_logits, 'pred_logits': pred_logits,
        'pred_sub_boxes': pred_sub_boxes, 'pred_obj_boxes': pred_obj_boxes,
    }
    results = pp(outputs, target_sizes)
    jax.block_until_ready(results)

    (_, ref_labels, ref_vs, ref_sb, ref_ob) = _reference_hoi(
        pred_obj_logits, pred_logits, pred_sub_boxes, pred_obj_boxes,
        target_sizes, dataset='hico')
    ref_labels = np.asarray(ref_labels)
    ref_vs, ref_sb, ref_ob = map(np.asarray, (ref_vs, ref_sb, ref_ob))
    for i in range(B):
        assert np.allclose(results[i]['verb_scores'], ref_vs[i], atol=1e-5)
        assert np.allclose(results[i]['boxes'][:Q], ref_sb[i], atol=1e-3)
        assert np.allclose(results[i]['boxes'][Q:], ref_ob[i], atol=1e-3)
        assert np.array_equal(results[i]['labels'][Q:], ref_labels[i])
        assert np.array_equal(results[i]['labels'][:Q],
                              np.full((Q,), 1, np.int32))
        assert np.array_equal(results[i]['sub_ids'], np.arange(Q))
        assert np.array_equal(results[i]['obj_ids'], np.arange(Q, 2 * Q))

    # ---- 'hoi' / 'vcoco' branch ----
    outputs_v = dict(outputs, dataset='vcoco')
    results_v = pp(outputs_v, target_sizes)
    jax.block_until_ready(results_v)
    (_, ref_labels_v, ref_vs_v, _, _) = _reference_hoi(
        pred_obj_logits, pred_logits, pred_sub_boxes, pred_obj_boxes,
        target_sizes, dataset='vcoco')
    ref_labels_v, ref_vs_v = np.asarray(ref_labels_v), np.asarray(ref_vs_v)
    for i in range(B):
        assert np.allclose(results_v[i]['verb_scores'], ref_vs_v[i], atol=1e-5)
        assert np.array_equal(results_v[i]['labels'][Q:], ref_labels_v[i])

    # ---- 'att' branch ----
    outputs_att = {
        'type': 'att',
        'pred_obj_logits': pred_obj_logits, 'pred_logits': pred_logits,
        'pred_obj_boxes': pred_obj_boxes,
    }
    results_att = pp(outputs_att, target_sizes)
    jax.block_until_ready(results_att)
    ref_attr = np.asarray(jax.nn.sigmoid(pred_logits))
    for i in range(B):
        assert np.allclose(results_att[i]['attr_scores'], ref_attr[i], atol=1e-5)
        assert np.array_equal(results_att[i]['labels'], ref_labels[i])
        assert np.allclose(results_att[i]['boxes'], ref_ob[i], atol=1e-3)
        assert np.array_equal(results_att[i]['obj_ids'], np.arange(Q))

    print("KERNEL_OK")
</pallas_src>

<mosaic_0001>
module attributes {stable_mosaic.version = 11 : i64} {
  func.func @_hoi_kernel(%arg0: i32, %arg1: memref<2x8x12xf32, #tpu.memory_space<vmem>>, %arg2: memref<2x8x16xf32, #tpu.memory_space<vmem>>, %arg3: memref<2x8x4xf32, #tpu.memory_space<vmem>>, %arg4: memref<2x8x4xf32, #tpu.memory_space<vmem>>, %arg5: memref<2x1x4xf32, #tpu.memory_space<vmem>>, %arg6: memref<2x8xi32, #tpu.memory_space<vmem>>, %arg7: memref<2x8x16xf32, #tpu.memory_space<vmem>>, %arg8: memref<2x8x4xf32, #tpu.memory_space<vmem>>, %arg9: memref<2x8x4xf32, #tpu.memory_space<vmem>>) attributes {dimension_semantics = [#tpu.dimension_semantics<parallel>], iteration_bounds = array<i64: 1>, scalar_prefetch = 0 : i64, scratch_operands = 0 : i64, tpu.core_type = #tpu.core_type<tc>, window_params = [{transform_indices = @transform_0, window_bounds = array<i64: 2, 8, 12>}, {transform_indices = @transform_1, window_bounds = array<i64: 2, 8, 16>}, {transform_indices = @transform_2, window_bounds = array<i64: 2, 8, 4>}, {transform_indices = @transform_3, window_bounds = array<i64: 2, 8, 4>}, {transform_indices = @transform_4, window_bounds = array<i64: 2, 1, 4>}, {transform_indices = @transform_5, window_bounds = array<i64: 2, 8>}, {transform_indices = @transform_6, window_bounds = array<i64: 2, 8, 16>}, {transform_indices = @transform_7, window_bounds = array<i64: 2, 8, 4>}, {transform_indices = @transform_8, window_bounds = array<i64: 2, 8, 4>}]} {
    %c0 = arith.constant 0 : index
    %c0_0 = arith.constant 0 : index
    %c0_1 = arith.constant 0 : index
    %0 = vector.load %arg1[%c0, %c0_0, %c0_1] : memref<2x8x12xf32, #tpu.memory_space<vmem>>, vector<2x8x12xf32>
    %1 = tpu.iota {dimensions = array<i32: 2>} : vector<2x8x12xi32>
    %c10_i32 = arith.constant 10 : i32
    %2 = vector.broadcast %c10_i32 : i32 to vector<2x8x12xi32>
    %3 = arith.cmpi slt, %1, %2 : vector<2x8x12xi32>
    %cst = arith.constant 0xFF800000 : f32
    %4 = vector.broadcast %cst : f32 to vector<2x8x12xf32>
    %5 = arith.select %3, %0, %4 : vector<2x8x12xi1>, vector<2x8x12xf32>
    %cst_2 = arith.constant dense<0xFF800000> : vector<2x8xf32>
    %6 = vector.multi_reduction <maximumf>, %5, %cst_2 [2] : vector<2x8x12xf32> to vector<2x8xf32>
    %7 = vector.shape_cast %6 : vector<2x8xf32> to vector<2x8x1xf32>
    %8 = vector.broadcast %7 : vector<2x8x1xf32> to vector<2x8x12xf32>
    %9 = arith.cmpf oeq, %5, %8 : vector<2x8x12xf32>
    %c12_i32 = arith.constant 12 : i32
    %10 = vector.broadcast %c12_i32 : i32 to vector<2x8x12xi32>
    %11 = arith.select %9, %1, %10 : vector<2x8x12xi1>, vector<2x8x12xi32>
    %cst_3 = arith.constant dense<2147483647> : vector<2x8xi32>
    %12 = vector.multi_reduction <minsi>, %11, %cst_3 [2] : vector<2x8x12xi32> to vector<2x8xi32>
    %c0_4 = arith.constant 0 : index
    %c0_5 = arith.constant 0 : index
    %13 = vector.load %arg6[%c0_4, %c0_5] : memref<2x8xi32, #tpu.memory_space<vmem>>, vector<2x8xi32>
    tpu.vector_store %arg6[%c0_4, %c0_5], %12 {strides = array<i32>} : memref<2x8xi32, #tpu.memory_space<vmem>>, vector<2x8xi32>,
    %14 = vector.extract_strided_slice %0 {offsets = [0, 0, 11], sizes = [2, 8, 1], strides = [1, 1, 1]} : vector<2x8x12xf32> to vector<2x8x1xf32>
    %15 = arith.maximumf %7, %14 : vector<2x8x1xf32>
    %16 = vector.broadcast %15 : vector<2x8x1xf32> to vector<2x8x12xf32>
    %17 = arith.subf %5, %16 : vector<2x8x12xf32>
    %18 = math.exp %17 : vector<2x8x12xf32>
    %cst_6 = arith.constant dense<0.000000e+00> : vector<2x8xf32>
    %19 = vector.multi_reduction <add>, %18, %cst_6 [2] : vector<2x8x12xf32> to vector<2x8xf32>
    %20 = vector.shape_cast %19 : vector<2x8xf32> to vector<2x8x1xf32>
    %21 = arith.subf %14, %15 : vector<2x8x1xf32>
    %22 = math.exp %21 : vector<2x8x1xf32>
    %23 = arith.addf %20, %22 : vector<2x8x1xf32>
    %24 = arith.subf %7, %15 : vector<2x8x1xf32>
    %25 = math.exp %24 : vector<2x8x1xf32>
    %26 = arith.divf %25, %23 : vector<2x8x1xf32>
    %c0_7 = arith.constant 0 : index
    %c0_8 = arith.constant 0 : index
    %c0_9 = arith.constant 0 : index
    %27 = vector.load %arg2[%c0_7, %c0_8, %c0_9] : memref<2x8x16xf32, #tpu.memory_space<vmem>>, vector<2x8x16xf32>
    %28 = arith.negf %27 : vector<2x8x16xf32>
    %29 = math.exp %28 : vector<2x8x16xf32>
    %cst_10 = arith.constant 1.000000e+00 : f32
    %30 = vector.broadcast %cst_10 : f32 to vector<2x8x16xf32>
    %31 = arith.addf %30, %29 : vector<2x8x16xf32>
    %32 = arith.divf %30, %31 : vector<2x8x16xf32>
    %33 = vector.broadcast %26 : vector<2x8x1xf32> to vector<2x8x16xf32>
    %34 = arith.mulf %32, %33 : vector<2x8x16xf32>
    %c0_11 = arith.constant 0 : index
    %c0_12 = arith.constant 0 : index
    %c0_13 = arith.constant 0 : index
    %35 = vector.load %arg7[%c0_11, %c0_12, %c0_13] : memref<2x8x16xf32, #tpu.memory_space<vmem>>, vector<2x8x16xf32>
    tpu.vector_store %arg7[%c0_11, %c0_12, %c0_13], %34 {strides = array<i32>} : memref<2x8x16xf32, #tpu.memory_space<vmem>>, vector<2x8x16xf32>,
    %c0_14 = arith.constant 0 : index
    %c0_15 = arith.constant 0 : index
    %c0_16 = arith.constant 0 : index
    %36 = vector.load %arg5[%c0_14, %c0_15, %c0_16] : memref<2x1x4xf32, #tpu.memory_space<vmem>>, vector<2x1x4xf32>
    %c0_17 = arith.constant 0 : index
    %c0_18 = arith.constant 0 : index
    %c0_19 = arith.constant 0 : index
    %37 = vector.load %arg3[%c0_17, %c0_18, %c0_19] : memref<2x8x4xf32, #tpu.memory_space<vmem>>, vector<2x8x4xf32>
    %38 = vector.extract_strided_slice %37 {offsets = [0, 0, 0], sizes = [2, 8, 1], strides = [1, 1, 1]} : vector<2x8x4xf32> to vector<2x8x1xf32>
    %39 = vector.extract_strided_slice %37 {offsets = [0, 0, 1], sizes = [2, 8, 1], strides = [1, 1, 1]} : vector<2x8x4xf32> to vector<2x8x1xf32>
    %40 = vector.extract_strided_slice %37 {offsets = [0, 0, 2], sizes = [2, 8, 1], strides = [1, 1, 1]} : vector<2x8x4xf32> to vector<2x8x1xf32>
    %cst_20 = arith.constant 5.000000e-01 : f32
    %41 = vector.broadcast %cst_20 : f32 to vector<2x8x1xf32>
    %42 = arith.mulf %41, %40 : vector<2x8x1xf32>
    %43 = vector.extract_strided_slice %37 {offsets = [0, 0, 3], sizes = [2, 8, 1], strides = [1, 1, 1]} : vector<2x8x4xf32> to vector<2x8x1xf32>
    %cst_21 = arith.constant 5.000000e-01 : f32
    %44 = vector.broadcast %cst_21 : f32 to vector<2x8x1xf32>
    %45 = arith.mulf %44, %43 : vector<2x8x1xf32>
    %46 = arith.subf %38, %42 : vector<2x8x1xf32>
    %47 = arith.subf %39, %45 : vector<2x8x1xf32>
    %48 = arith.addf %38, %42 : vector<2x8x1xf32>
    %49 = arith.addf %39, %45 : vector<2x8x1xf32>
    %50 = tpu.concatenate %46, %47, %48, %49 in 2 : vector<2x8x1xf32>, vector<2x8x1xf32>, vector<2x8x1xf32>, vector<2x8x1xf32> -> vector<2x8x4xf32>
    %51 = vector.broadcast %36 : vector<2x1x4xf32> to vector<2x8x4xf32>
    %52 = arith.mulf %50, %51 : vector<2x8x4xf32>
    %c0_22 = arith.constant 0 : index
    %c0_23 = arith.constant 0 : index
    %c0_24 = arith.constant 0 : index
    %53 = vector.load %arg8[%c0_22, %c0_23, %c0_24] : memref<2x8x4xf32, #tpu.memory_space<vmem>>, vector<2x8x4xf32>
    tpu.vector_store %arg8[%c0_22, %c0_23, %c0_24], %52 {strides = array<i32>} : memref<2x8x4xf32, #tpu.memory_space<vmem>>, vector<2x8x4xf32>,
    %c0_25 = arith.constant 0 : index
    %c0_26 = arith.constant 0 : index
    %c0_27 = arith.constant 0 : index
    %54 = vector.load %arg4[%c0_25, %c0_26, %c0_27] : memref<2x8x4xf32, #tpu.memory_space<vmem>>, vector<2x8x4xf32>
    %55 = vector.extract_strided_slice %54 {offsets = [0, 0, 0], sizes = [2, 8, 1], strides = [1, 1, 1]} : vector<2x8x4xf32> to vector<2x8x1xf32>
    %56 = vector.extract_strided_slice %54 {offsets = [0, 0, 1], sizes = [2, 8, 1], strides = [1, 1, 1]} : vector<2x8x4xf32> to vector<2x8x1xf32>
    %57 = vector.extract_strided_slice %54 {offsets = [0, 0, 2], sizes = [2, 8, 1], strides = [1, 1, 1]} : vector<2x8x4xf32> to vector<2x8x1xf32>
    %cst_28 = arith.constant 5.000000e-01 : f32
    %58 = vector.broadcast %cst_28 : f32 to vector<2x8x1xf32>
    %59 = arith.mulf %58, %57 : vector<2x8x1xf32>
    %60 = vector.extract_strided_slice %54 {offsets = [0, 0, 3], sizes = [2, 8, 1], strides = [1, 1, 1]} : vector<2x8x4xf32> to vector<2x8x1xf32>
    %cst_29 = arith.constant 5.000000e-01 : f32
    %61 = vector.broadcast %cst_29 : f32 to vector<2x8x1xf32>
    %62 = arith.mulf %61, %60 : vector<2x8x1xf32>
    %63 = arith.subf %55, %59 : vector<2x8x1xf32>
    %64 = arith.subf %56, %62 : vector<2x8x1xf32>
    %65 = arith.addf %55, %59 : vector<2x8x1xf32>
    %66 = arith.addf %56, %62 : vector<2x8x1xf32>
    %67 = tpu.concatenate %63, %64, %65, %66 in 2 : vector<2x8x1xf32>, vector<2x8x1xf32>, vector<2x8x1xf32>, vector<2x8x1xf32> -> vector<2x8x4xf32>
    %68 = vector.broadcast %36 : vector<2x1x4xf32> to vector<2x8x4xf32>
    %69 = arith.mulf %67, %68 : vector<2x8x4xf32>
    %c0_30 = arith.constant 0 : index
    %c0_31 = arith.constant 0 : index
    %c0_32 = arith.constant 0 : index
    %70 = vector.load %arg9[%c0_30, %c0_31, %c0_32] : memref<2x8x4xf32, #tpu.memory_space<vmem>>, vector<2x8x4xf32>
    tpu.vector_store %arg9[%c0_30, %c0_31, %c0_32], %69 {strides = array<i32>} : memref<2x8x4xf32, #tpu.memory_space<vmem>>, vector<2x8x4xf32>,
    return
  }
  func.func @transform_0(%arg0: i32) -> (i32, i32, i32) {
    %c0_i32 = arith.constant 0 : i32
    %c0_i32_0 = arith.constant 0 : i32
    %c0_i32_1 = arith.constant 0 : i32
    return %arg0, %c0_i32, %c0_i32_0 : i32, i32, i32
  }
  func.func @transform_1(%arg0: i32) -> (i32, i32, i32) {
    %c0_i32 = arith.constant 0 : i32
    %c0_i32_0 = arith.constant 0 : i32
    %c0_i32_1 = arith.constant 0 : i32
    return %arg0, %c0_i32, %c0_i32_0 : i32, i32, i32
  }
  func.func @transform_2(%arg0: i32) -> (i32, i32, i32) {
    %c0_i32 = arith.constant 0 : i32
    %c0_i32_0 = arith.constant 0 : i32
    %c0_i32_1 = arith.constant 0 : i32
    return %arg0, %c0_i32, %c0_i32_0 : i32, i32, i32
  }
  func.func @transform_3(%arg0: i32) -> (i32, i32, i32) {
    %c0_i32 = arith.constant 0 : i32
    %c0_i32_0 = arith.constant 0 : i32
    %c0_i32_1 = arith.constant 0 : i32
    return %arg0, %c0_i32, %c0_i32_0 : i32, i32, i32
  }
  func.func @transform_4(%arg0: i32) -> (i32, i32, i32) {
    %c0_i32 = arith.constant 0 : i32
    %c0_i32_0 = arith.constant 0 : i32
    %c0_i32_1 = arith.constant 0 : i32
    return %arg0, %c0_i32, %c0_i32_0 : i32, i32, i32
  }
  func.func @transform_5(%arg0: i32) -> (i32, i32) {
    %c0_i32 = arith.constant 0 : i32
    %c0_i32_0 = arith.constant 0 : i32
    return %arg0, %c0_i32 : i32, i32
  }
  func.func @transform_6(%arg0: i32) -> (i32, i32, i32) {
    %c0_i32 = arith.constant 0 : i32
    %c0_i32_0 = arith.constant 0 : i32
    %c0_i32_1 = arith.constant 0 : i32
    return %arg0, %c0_i32, %c0_i32_0 : i32, i32, i32
  }
  func.func @transform_7(%arg0: i32) -> (i32, i32, i32) {
    %c0_i32 = arith.constant 0 : i32
    %c0_i32_0 = arith.constant 0 : i32
    %c0_i32_1 = arith.constant 0 : i32
    return %arg0, %c0_i32, %c0_i32_0 : i32, i32, i32
  }
  func.func @transform_8(%arg0: i32) -> (i32, i32, i32) {
    %c0_i32 = arith.constant 0 : i32
    %c0_i32_0 = arith.constant 0 : i32
    %c0_i32_1 = arith.constant 0 : i32
    return %arg0, %c0_i32, %c0_i32_0 : i32, i32, i32
  }
}

</mosaic_0001>

<bundles_post_ra>
// kernel: _hoi_device.1
= control target key start
LH: loop header
LB: loop body
LE: loop exit
PB: predicated region body
PF: predicated region fallthrough
CT: control target
= control target key end

     0   :  { %14 = vsyncpa [#allocation3], 0  ;;  %v28_v0 = vlaneseq  ;;  %s558_s0 = inlined_call_operand.vmem [shape: f32[2,8,12], index: 0, kind: input, shape index: {}]   ;;  %s559_s1 = inlined_call_operand.vmem [shape: f32[2,8,16], index: 1, kind: input, shape index: {}]   ;;  %s560_s2 = inlined_call_operand.vmem [shape: f32[2,8,4], index: 2, kind: input, shape index: {}]   ;;  %s561_s3 = inlined_call_operand.vmem [shape: f32[2,8,4], index: 3, kind: input, shape index: {}]   ;;  %s562_s4 = inlined_call_operand.vmem [shape: f32[2,1,4], index: 4, kind: input, shape index: {}]   ;;  %s563_s5 = inlined_call_operand.hbm [shape: s32[2,8], index: 5, kind: output, shape index: {0}]   ;;  %s564_s6 = inlined_call_operand.hbm [shape: f32[2,8,16], index: 6, kind: output, shape index: {1}]   ;;  %s565_s7 = inlined_call_operand.vmem [shape: f32[2,8,4], index: 7, kind: output, shape index: {2}]   ;;  %s566_s8 = inlined_call_operand.vmem [shape: f32[2,8,4], index: 8, kind: output, shape index: {3}]  }
   0x1   :  { %15 = vsyncpa [#allocation5], 0  ;;  %v412_v1 = vld [vmem:[%s558_s0] sm:$0xff]  ;;  %v420_v3 = vld [vmem:[%s558_s0 + $0x8] sm:$0xff]  ;;  %vm33_vm0 = vcmask 97280   ;;  %v357_v8 = vmov 11  }
   0x2   :  { %v415_v2 = vand.u32 127, %v28_v0  ;;  %287 = vset.pattern.permute.xlu1 %v357_v8  ;;  %288 = vset.pattern.permute.xlu0 %v357_v8  ;;  %v159_v9 = vld [vmem:[%s560_s2] sm:$0xff]  ;;  %v433_v11 = vld [vmem:[%s560_s2 + $0x8] sm:$0xff]  ;;  %s358_s12 = smov 126   ;;  %s359_s14 = smov 2   ;;  %vm183_vm4 = vcmask 15360  }
   0x3   :  { %v161_v10 = vmul.f32 0.5, %v159_v9  ;;  %v162_v12 = vmul.f32 0.5, %v433_v11  ;;  %v455_v20 = vld [vmem:[%s561_s3] sm:$0xff]  ;;  %vm186_vm5 = vcmask 23552   ;;  %vm203_vm6 = vcmask 31744   ;;  %v489_v48 = vld [vmem:[%s561_s3 + $0x8] sm:$0xff] }
   0x4   :  { %vm30_vm1 = vcmp.lt.s32.totalorder %v415_v2, 10  ;;  %v208_v26 = vmul.f32 0.5, %v455_v20  ;;  %v475_v39 = vld [vmem:[%s562_s4] ss:$0 sm:$0xff]  ;;  %v209_v51 = vmul.f32 0.5, %v489_v48  ;;  %vm82_vm9 = vcmask 1041409  }
   0x5   :  { %v31_v4 = vsel %vm30_vm1, %v412_v1, -inf  ;;  %v32_v5 = vsel %vm30_vm1, %v420_v3, -inf  ;;  %vm84_vm10 = vcmask 58368  }
   0x6   :  { %v34_v6 = vsel %vm33_vm0, %v31_v4, -inf  ;;  %v37_v7 = vsel %vm33_vm0, %v32_v5, -inf }
   0x7   :  { %35 = vmax.xlane.f32.xlu0 %v34_v6 }
   0xb   :  { %38 = vmax.xlane.f32.xlu0 %v37_v7 }
  0x21   :  { %165 = vrot.lane.b32.xlu0 %v161_v10, %s358_s12 }
  0x25   :  { %167 = vrot.lane.b32.xlu0 %v162_v12, %s358_s12  ;;  %v509_v12 = vld [vmem:[%s562_s4 + $0x1] ss:$0 sm:$0xff]  ;;  %s360_s4 = smov [#allocation2]  }
  0x90   :  { %v438_v13 = vpop.xlane.xlu0 %35 }
  0x91   :  { %vm40_vm2 = vcmp.eq.f32.partialorder %v31_v4, %v438_v13  ;;  %v443_v14 = vmax.f32 %v438_v13, %v412_v1 }
  0x92   :  { %v42_v15 = vsel %vm40_vm2, %v415_v2, 12 }
  0x93   :  { %v118_v16 = vsub.f32 %v438_v13, %v443_v14  ;;  %90 = vperm.xlu1 %287, %v443_v14   ;;  %v44_v17 = vsel %vm33_vm0, %v42_v15, 2147483647  ;;  %v110_v60 = vsub.f32 %v412_v1, %v443_v14 }
  0x94   :  { %v450_v18 = vpop.xlane.xlu0 %38  ;;  %v46_v19 = vshra.s32 %v44_v17, 16  ;;  %v45_v53 = vand.u32 65535, %v44_v17 }
  0x95   :  { %vm41_vm3 = vcmp.eq.f32.partialorder %v32_v5, %v450_v18  ;;  %v460_v21 = vmax.f32 %v450_v18, %v420_v3  ;;  %v112_v61 = vmul.f32 1.442695, %v110_v60 }
  0x96   :  { %v48_v22 = vcvt.s32.f32 %v46_v19  ;;  %v43_v23 = vsel %vm41_vm3, %v415_v2, 12  ;;  %v47_v55 = vcvt.s32.f32 %v45_v53 }
  0x97   :  { %v119_v24 = vsub.f32 %v450_v18, %v460_v21  ;;  %95 = vperm.xlu1 %287, %v460_v21   ;;  %v59_v25 = vsel %vm33_vm0, %v43_v23, 2147483647  ;;  %v111_v62 = vsub.f32 %v420_v3, %v460_v21 }
  0x98   :  { %49 = vmin.xlane.f32.xlu0 %v48_v22  ;;  %v61_v27 = vshra.s32 %v59_v25, 16  ;;  %v166_v28 = vpop.permute.xlu0 %165  ;;  %v60_v56 = vand.u32 65535, %v59_v25 }
  0x99   :  { %v173_v30 = vadd.f32 %v166_v28, %v159_v9  ;;  %v171_v38 = vsub.f32 %v159_v9, %v166_v28  ;;  %v114_v63 = vmul.f32 1.442695, %v111_v62  ;;  %v122_v8 = vmul.f32 1.442695, %v119_v24 }
  0x9a   :  { %v63_v29 = vcvt.s32.f32 %v61_v27  ;;  %v62_v58 = vcvt.s32.f32 %v60_v56 }
  0x9b   :  { %212 = vrot.lane.b32.xlu1 %v208_v26, %s358_s12 }
  0x9c   :  { %64 = vmin.xlane.f32.xlu0 %v63_v29  ;;  %v168_v49 = vpop.permute.xlu0 %167 }
  0x9d   :  { %v174_v50 = vadd.f32 %v168_v49, %v433_v11  ;;  %v172_v3 = vsub.f32 %v433_v11, %v168_v49 }
  0x9f   :  { %177 = vrot.lane.b32.xlu1 %v173_v30, %s359_s14 }
 0x10e   :  { %v91_v31 = vpop.permute.xlu1 %90 }
 0x10f   :  { %v98_v32 = vsub.f32 %v31_v4, %v91_v31  ;;  %v120_v4 = vmul.f32 1.442695, %v118_v16 }
 0x111   :  { %v100_v33 = vmul.f32 1.442695, %v98_v32 }
 0x112   :  { %v96_v34 = vpop.permute.xlu1 %95 }
 0x113   :  { %289 = vpow2.f32 %v100_v33  ;;  %v99_v35 = vsub.f32 %v32_v5, %v96_v34 }
 0x115   :  { %v102_v36 = vmul.f32 1.442695, %v99_v35 }
 0x116   :  { %v470_v37 = vpop.permute.xlu1 %212 }
 0x117   :  { %291 = vpow2.f32 %v102_v36  ;;  %v220_v25 = vadd.f32 %v470_v37, %v455_v20 }
 0x118   :  { %293 = vpow2.f32 %v112_v61 }
 0x119   :  { %295 = vpow2.f32 %v114_v63 }
 0x11a   :  { %v178_v40 = vpop.permute.xlu1 %177  ;;  %297 = vpow2.f32 %v120_v4 }
 0x11b   :  { %v184_v41 = vsel %vm183_vm4, %v171_v38, %v178_v40 }
 0x11c   :  { %v187_v42 = vsel %vm186_vm5, %v184_v41, %v178_v40 }
 0x11d   :  { %v201_v43 = vmul.f32 %v475_v39, %v187_v42 }
 0x11f   :  { %204 = vst.msk [vmem:[%s565_s7] sm:$0xff] %vm203_vm6, %v201_v43 }
 0x120   :  { %v290_v44 = vpop.eup %289 }
 0x121   :  { %v104_v45 = vsel %vm33_vm0, %v290_v44, 0.0  ;;  %v50_v52 = vpop.xlane.xlu0 %49 }
 0x122   :  { %105 = vadd.xlane.f32.xlu0 %v104_v45  ;;  %vm51_vm7 = vcmp.eq.f32.partialorder %v48_v22, %v50_v52  ;;  %v56_v26 = vcvt.f32.s32 %v50_v52 }
 0x123   :  { %v52_v57 = vsel %vm51_vm7, %v47_v55, inf }
 0x124   :  { %v292_v46 = vpop.eup %291  ;;  %v57_v31 = vshll.u32 %v56_v26, 16 }
 0x125   :  { %v107_v47 = vsel %vm33_vm0, %v292_v46, 0.0  ;;  %v65_v54 = vpop.xlane.xlu0 %64  ;;  %v294_v5 = vpop.eup %293 }
 0x126   :  { %108 = vadd.xlane.f32.xlu1 %v107_v47  ;;  %vm66_vm8 = vcmp.eq.f32.partialorder %v63_v29, %v65_v54  ;;  %v296_v1 = vpop.eup %295  ;;  %v71_v28 = vcvt.f32.s32 %v65_v54  ;;  %v75_v29 = vshrl.u32 %v28_v0, 7 }
 0x127   :  { %v67_v59 = vsel %vm66_vm8, %v62_v58, inf  ;;  %v298_v17 = vpop.eup %297 }
 0x128   :  { %v72_v33 = vshll.u32 %v71_v28, 16  ;;  %v76_v34 = vsub.s32 %v415_v2, %v75_v29 }
 0x137   :  { %179 = vrot.lane.b32.xlu1 %v174_v50, %s359_s14 }
 0x138   :  { %214 = vrot.lane.b32.xlu0 %v209_v51, %s358_s12 }
 0x157   :  { %53 = vmin.xlane.f32.xlu0 %v52_v57 }
 0x15b   :  { %68 = vmin.xlane.f32.xlu1 %v67_v59 }
 0x1ab   :  { %v106_v6 = vpop.xlane.xlu0 %105 }
 0x1ac   :  { %v116_v7 = vadd.f32 %v294_v5, %v106_v6 }
 0x1ae   :  { %299 = vrcp.f32 %v116_v7 }
 0x1af   :  { %v109_v9 = vpop.xlane.xlu1 %108  ;;  %301 = vpow2.f32 %v122_v8  ;;  %v518_v18 = vpop.permute.xlu0 %214 }
 0x1b0   :  { %v117_v10 = vadd.f32 %v296_v1, %v109_v9  ;;  %v221_v22 = vadd.f32 %v518_v18, %v489_v48 }
 0x1b2   :  { %303 = vrcp.f32 %v117_v10 }
 0x1b3   :  { %v180_v13 = vpop.permute.xlu1 %179 }
 0x1b4   :  { %v185_v14 = vsel %vm183_vm4, %v172_v3, %v180_v13 }
 0x1b5   :  { %v188_v15 = vsel %vm186_vm5, %v185_v14, %v180_v13 }
 0x1b6   :  { %v202_v16 = vmul.f32 %v509_v12, %v188_v15 }
 0x1b8   :  { %205 = vst.msk [vmem:[%s565_s7 + $0x8] sm:$0xff] %vm203_vm6, %v202_v16  ;;  %s244_s7 = sshll.u32 %s360_s4, 4  ;;  %s245_s7 = int_to_ptr.vmem [resolvable:$true] %s244_s7 }
 0x1b9   :  { %s313_s24 = scalar_lea.vmem %s245_s7, 32  ;;  %p318_p1 = scmp.lt.s32.totalorder %s245_s7, %s245_s7 }
 0x1ba   :  { %p314_p0 = scmp.ne.s32.totalorder %s245_s7, %s313_s24  ;;  %p319_p2 = scmp.lt.s32.totalorder %s313_s24, %s313_s24 }
 0x1bb   :  { %v300_v11 = vpop.eup %299 }
 0x1bc   :  { %v125_v19 = vmul.f32 %v300_v11, %v298_v17  ;;  %v302_v21 = vpop.eup %301  ;;  %p320_p3 = por %p319_p2, %p318_p1 }
 0x1be   :  { %144 = vperm.xlu0 %288, %v125_v19   ;;  %p321_p4 = pnand %p320_p3, %p314_p0 }
 0x1bf   :  { %v304_v23 = vpop.eup %303 }
 0x1c0   :  { %v127_v24 = vmul.f32 %v304_v23, %v302_v21 }
 0x1c2   :  { %149 = vperm.xlu1 %287, %v127_v24   ;;  %226 = vrot.lane.b32.xlu0 %v221_v22, %s359_s14 }
 0x1c6   :  { %224 = vrot.lane.b32.xlu1 %v220_v25, %s359_s14 }
 0x1e0   :  { %v54_v27 = vpop.xlane.xlu0 %53 }
 0x1e1   :  { %v55_v30 = vcvt.f32.s32 %v54_v27 }
 0x1e3   :  { %v58_v35 = vadd.s32 %v57_v31, %v55_v30 }
 0x1e4   :  { %v69_v32 = vpop.xlane.xlu1 %68 }
 0x1e5   :  { %v70_v36 = vcvt.f32.s32 %v69_v32  ;;  %v77_v40 = vrot.slane %v58_v35, %v76_v34 }
 0x1e7   :  { %v73_v38 = vadd.s32 %v72_v33, %v70_v36 }
 0x1e9   :  { %v81_v41 = vrot.slane %v73_v38, %v76_v34 }
 0x1eb   :  { %v83_v42 = vsel %vm82_vm9, %v81_v41, %v77_v40 }
 0x1ec   :  { %85 = vst.msk [vmem:[#allocation2] sm:$0x3] %vm84_vm10, %v83_v42 }
 0x1ed   :  { %324 = shalt.err (!%p321_p4)
}
 0x1ee   :  { %247 = dma.vmem_to_hbm [thread:$0]  %s245_s7, 32, %s563_s5, [#allocation3]   ;;  %v128_v0 = vld [vmem:[%s559_s1] sm:$0xff]  ;;  %v129_v43 = vld [vmem:[%s559_s1 + $0x8] sm:$0xff]  ;;  %vm154_vm11 = vcmask 130048   ;;  %v219_v54 = vsub.f32 %v489_v48, %v518_v18  ;;  %v218_v60 = vsub.f32 %v455_v20, %v470_v37 }
 0x1ef   :  { %v276_v2 = vmul.f32 -1.442695, %v128_v0  ;;  %v277_v44 = vmul.f32 -1.442695, %v129_v43  ;;  %s361_s5 = smov [#allocation4]  }
 0x1f0   :  { %s253_s9 = sshll.u32 %s361_s5, 4  ;;  %s254_s9 = int_to_ptr.vmem [resolvable:$true] %s253_s9 }
 0x1f1   :  { %305 = vpow2.f32 %v276_v2  ;;  %s333_s1 = scalar_lea.vmem %s254_s9, 256  ;;  %p338_p6 = scmp.lt.s32.totalorder %s254_s9, %s254_s9 }
 0x1f2   :  { %307 = vpow2.f32 %v277_v44  ;;  %p334_p5 = scmp.ne.s32.totalorder %s254_s9, %s333_s1  ;;  %p339_p7 = scmp.lt.s32.totalorder %s333_s1, %s333_s1 }
 0x1f4   :  { %p340_p8 = por %p339_p7, %p338_p6 }
 0x1f6   :  { %p341_p9 = pnand %p340_p8, %p334_p5 }
 0x1fe   :  { %v306_v45 = vpop.eup %305 }
 0x1ff   :  { %v136_v46 = vadd.f32 1.0, %v306_v45  ;;  %v308_v47 = vpop.eup %307 }
 0x200   :  { %v137_v49 = vadd.f32 1.0, %v308_v47 }
 0x201   :  { %309 = vrcp.f32 %v136_v46 }
 0x202   :  { %311 = vrcp.f32 %v137_v49 }
 0x20e   :  { %v310_v50 = vpop.eup %309 }
 0x20f   :  { %v312_v53 = vpop.eup %311 }
 0x239   :  { %v145_v51 = vpop.permute.xlu0 %144 }
 0x23a   :  { %v152_v52 = vmul.f32 %v310_v50, %v145_v51 }
 0x23c   :  { %155 = vst.msk [vmem:[#allocation4] sm:$0xff] %vm154_vm11, %v152_v52 }
 0x23d   :  { %v150_v55 = vpop.permute.xlu1 %149  ;;  %v227_v56 = vpop.permute.xlu0 %226 }
 0x23e   :  { %v153_v57 = vmul.f32 %v312_v53, %v150_v55  ;;  %v231_v58 = vsel %vm183_vm4, %v219_v54, %v227_v56 }
 0x23f   :  { %v233_v59 = vsel %vm186_vm5, %v231_v58, %v227_v56 }
 0x240   :  { %156 = vst.msk [vmem:[#allocation4 + $0x8] sm:$0xff] %vm154_vm11, %v153_v57  ;;  %v235_v61 = vmul.f32 %v509_v12, %v233_v59 }
 0x241   :  { %v225_v62 = vpop.permute.xlu1 %224 }
 0x242   :  { %344 = shalt.err (!%p341_p9)
}
 0x243   :  { %s362_s10 = smov 128   ;;  %s363_s0 = smov 8   ;;  %237 = vst.msk [vmem:[%s566_s8 + $0x8] sm:$0xff] %vm203_vm6, %v235_v61  ;;  %v230_v20 = vsel %vm183_vm4, %v218_v60, %v225_v62 }
 0x244   :  { %259 = dma.vmem_to_hbm [thread:$0]  %s254_s9, 256, %s564_s6, [#allocation5], %s362_s10, %s362_s10, %s363_s0   ;;  %v232_v37 = vsel %vm186_vm5, %v230_v20, %v225_v62 }
 0x245   :  { %v234_v48 = vmul.f32 %v475_v39, %v232_v37 }
 0x247   :  { %236 = vst.msk [vmem:[%s566_s8] sm:$0xff] %vm203_vm6, %v234_v48 }
 0x248   :  { %353 = dma.done.wait [#allocation3], 32  }
 0x249   :  { %354 = vsyncadd [#allocation3], 4294967264 }
 0x24a   :  { %355 = dma.done.wait [#allocation5], 256  }
 0x24b   :  { %356 = vsyncadd [#allocation5], 4294967040 }
 0x24c   :  { %274 = vsyncpa [#allocation3], 1 }
 0x24d   :  { %275 = vsyncpa [#allocation5], 1 }

</bundles_post_ra>
